<compile_context>
chip_gen: v6e
topology: v6e:2x2x1
jax: 0.10.0
libtpu: 0.0.40
codegen_flags: <defaults>
</compile_context>

<pallas_src>
import jax
import jax.numpy as jnp
from jax.experimental import pallas as pl
from jax.experimental.pallas import tpu as pltpu

L = 64            # sequence length after the fc reshape (fixed by the module: 4 * 64)
C_FC = 4          # channels coming out of the fc reshape
OUT_PAD = 128     # lane-dense output width; real output is the first 64 columns
MAX_TILE_B = 2048 # batch-tile cap (VMEM budget ~12 MiB at this size, fits all gens)


def _round_up(x, m):
    return ((x + m - 1) // m) * m


def _band_matrix(w):
    """Conv1d(k=3, pad=1) weights (Cout, Cin, 3) -> banded dense (Cin*L, Cout*L).

    band[c*L + li, o*L + lo] = sum_k w[o, c, k] * [li == lo + k - 1]
    which reproduces  out[o, lo] = sum_c sum_k w[o,c,k] * x[c, lo + k - 1]  (zero pad).
    """
    w = w.astype(jnp.float32)
    cout, cin, K = w.shape
    idx = jnp.arange(L)
    shifts = jnp.stack(
        [(idx[:, None] == (idx[None, :] + k - 1)).astype(jnp.float32) for k in range(K)],
        axis=0)                                          # (K, L_in, L_out)
    blocks = jnp.einsum("ock,kij->cioj", w, shifts)       # (Cin, L, Cout, L)
    return blocks.reshape(cin * L, cout * L)


def prepare_decoder_params(params):
    """One-time weight preparation (hoisted out of the per-forward path).

    Builds the banded conv matrices, fuses fc with conv1, pads the output band
    to 128 lanes, and casts the matmul weights to bf16 (biases stay f32).
    """
    band1 = _band_matrix(params["w1"])                    # (256, 512)
    band2 = _band_matrix(params["w2"])                    # (512, 256)
    band3 = _band_matrix(params["w3"])                    # (256, 64)

    wfc = params["fc_w"].astype(jnp.float32).T            # (latent, 256), channel-major cols
    wf = wfc @ band1                                      # (latent, 512)
    bf = (params["fc_b"].astype(jnp.float32) @ band1
          + jnp.repeat(params["b1"].astype(jnp.float32), L))          # (512,)
    b2f = jnp.repeat(params["b2"].astype(jnp.float32), L)             # (256,)
    b3f = jnp.repeat(params["b3"].astype(jnp.float32), L)             # (64,)

    # Lane-dense output path: pad conv3 band / bias from 64 -> 128 columns.
    band3p = jnp.pad(band3, ((0, 0), (0, OUT_PAD - L)))
    b3fp = jnp.pad(b3f, (0, OUT_PAD - L))

    return {
        "wf": wf.astype(jnp.bfloat16),                    # (latent, 512) bf16
        "bf": bf.reshape(1, -1).astype(jnp.float32),      # (1, 512)   f32
        "band2": band2.astype(jnp.bfloat16),              # (512, 256) bf16
        "b2f": b2f.reshape(1, -1).astype(jnp.float32),    # (1, 256)   f32
        "band3": band3p.astype(jnp.bfloat16),             # (256, 128) bf16
        "b3f": b3fp.reshape(1, -1).astype(jnp.float32),   # (1, 128)   f32
    }


def _decoder_kernel(z_ref, wf_ref, bf_ref, w2_ref, b2_ref, w3_ref, b3_ref, out_ref):
    # Fused fc + conv1: (TILE_B, latent) @ (latent, 512), bf16 in / f32 acc.
    h1 = jnp.dot(z_ref[...], wf_ref[...], preferred_element_type=jnp.float32)
    h1 = jnp.maximum(h1 + bf_ref[...], 0.0)
    # conv2: (TILE_B, 512) @ (512, 256)
    h2 = jnp.dot(h1.astype(jnp.bfloat16), w2_ref[...],
                 preferred_element_type=jnp.float32)
    h2 = jnp.maximum(h2 + b2_ref[...], 0.0)
    # conv3 (output padded to 128 lanes): (TILE_B, 256) @ (256, 128)
    h3 = jnp.dot(h2.astype(jnp.bfloat16), w3_ref[...],
                 preferred_element_type=jnp.float32) + b3_ref[...]
    out_ref[...] = h3.astype(out_ref.dtype)


def _choose_tile(b8):
    # Small/medium B: one big tile (single grid step, min per-step overhead).
    if b8 <= 1024:
        return b8
    # Large B: large tiles to feed the MXU, but keep >= 2 grid steps so the
    # "parallel" batch axis can be split across both TensorCores on v7x.
    return min(MAX_TILE_B, _round_up((b8 + 1) // 2, 8))


def decoder_conv_forward(z, fused):
    """z: (B, latent_dim) float32, fused = prepare_decoder_params(params) -> (B, 64) f32."""
    B, latent = z.shape

    b8 = _round_up(max(B, 8), 8)
    tile_b = _choose_tile(b8)
    b_pad = _round_up(b8, tile_b)

    z_p = z.astype(jnp.float32)
    if b_pad != B:
        z_p = jnp.pad(z_p, ((0, b_pad - B), (0, 0)))
    z_p = z_p.astype(jnp.bfloat16)

    # Advisory cost estimate so XLA can overlap the surrounding graph.
    flops = 2 * b_pad * (latent * 8 * L + (8 * L) * (4 * L) + (4 * L) * OUT_PAD)
    bytes_accessed = (b_pad * latent * 2 + b_pad * OUT_PAD * 4
                      + latent * 8 * L * 2 + 8 * L * 4 * L * 2 + 4 * L * OUT_PAD * 2
                      + (8 * L + 4 * L + OUT_PAD) * 4)

    const2 = lambda b: (0, 0)
    out = pl.pallas_call(
        _decoder_kernel,
        out_shape=jax.ShapeDtypeStruct((b_pad, OUT_PAD), jnp.float32),
        grid_spec=pltpu.PrefetchScalarGridSpec(
            num_scalar_prefetch=0,
            grid=(b_pad // tile_b,),
            in_specs=[
                pl.BlockSpec((tile_b, latent), lambda b: (b, 0)),   # z tile
                pl.BlockSpec((latent, 8 * L), const2),              # fused fc+conv1 weight
                pl.BlockSpec((1, 8 * L), const2),                   # fused bias
                pl.BlockSpec((8 * L, 4 * L), const2),               # conv2 band
                pl.BlockSpec((1, 4 * L), const2),                   # conv2 bias
                pl.BlockSpec((4 * L, OUT_PAD), const2),             # conv3 band (lane-padded)
                pl.BlockSpec((1, OUT_PAD), const2),                 # conv3 bias (lane-padded)
            ],
            out_specs=pl.BlockSpec((tile_b, OUT_PAD), lambda b: (b, 0)),
        ),
        compiler_params=pltpu.CompilerParams(
            dimension_semantics=("parallel",),
            vmem_limit_bytes=32 * 1024 * 1024),
        cost_estimate=pl.CostEstimate(
            flops=flops, transcendentals=0, bytes_accessed=bytes_accessed),
    )(z_p, fused["wf"], fused["bf"], fused["band2"], fused["b2f"],
      fused["band3"], fused["b3f"])
    return out[:B, :L]


def reference_forward(z, params):
    """Pure-JAX f32 reference matching the PyTorch module exactly."""
    h = z @ params["fc_w"].T + params["fc_b"]       # (B, 256)
    h = h.reshape(z.shape[0], C_FC, L)

    def conv1d(x, w, b):
        # x (B, Cin, L), w (Cout, Cin, 3), b (Cout,)
        xp = jnp.pad(x, ((0, 0), (0, 0), (1, 1)))
        out = jnp.zeros((x.shape[0], w.shape[0], L), jnp.float32)
        for k in range(3):
            out = out + jnp.einsum("bcl,oc->bol", xp[:, :, k:k + L], w[:, :, k])
        return out + b[None, :, None]

    h = jax.nn.relu(conv1d(h, params["w1"], params["b1"]))
    h = jax.nn.relu(conv1d(h, params["w2"], params["b2"]))
    h = conv1d(h, params["w3"], params["b3"])
    return h.squeeze(1)


def make_params(latent_dim, key):
    ks = jax.random.split(key, 8)
    s = 0.1
    return {
        "fc_w": s * jax.random.normal(ks[0], (C_FC * L, latent_dim), jnp.float32),
        "fc_b": s * jax.random.normal(ks[1], (C_FC * L,), jnp.float32),
        "w1": s * jax.random.normal(ks[2], (8, 4, 3), jnp.float32),
        "b1": s * jax.random.normal(ks[3], (8,), jnp.float32),
        "w2": s * jax.random.normal(ks[4], (4, 8, 3), jnp.float32),
        "b2": s * jax.random.normal(ks[5], (4,), jnp.float32),
        "w3": s * jax.random.normal(ks[6], (1, 4, 3), jnp.float32),
        "b3": s * jax.random.normal(ks[7], (1,), jnp.float32),
    }


if __name__ == "__main__":
    key = jax.random.PRNGKey(0)
    k_z, k_p = jax.random.split(key)

    batch, latent_dim = 2, 32
    z = jax.random.normal(k_z, (batch, latent_dim), jnp.float32)
    params = make_params(latent_dim, k_p)

    # One-time weight prep (hoisted out of the forward path).
    fused = jax.tree_util.tree_map(jax.block_until_ready, prepare_decoder_params(params))

    out = decoder_conv_forward(z, fused)
    out = jax.block_until_ready(out)

    ref = reference_forward(z, params)
    assert out.shape == (batch, L)
    # bf16 MXU operands -> relaxed tolerance vs the pure-f32 reference.
    assert jnp.allclose(out, ref, rtol=1e-2, atol=1e-2), (
        f"max abs err {jnp.max(jnp.abs(out - ref))}")

    print("KERNEL_OK")
</pallas_src>

<mosaic_0001>
module attributes {stable_mosaic.version = 11 : i64} {
  func.func @_decoder_kernel(%arg0: i32, %arg1: memref<8x32xbf16, #tpu.memory_space<vmem>>, %arg2: memref<32x512xbf16, #tpu.memory_space<vmem>>, %arg3: memref<1x512xf32, #tpu.memory_space<vmem>>, %arg4: memref<512x256xbf16, #tpu.memory_space<vmem>>, %arg5: memref<1x256xf32, #tpu.memory_space<vmem>>, %arg6: memref<256x128xbf16, #tpu.memory_space<vmem>>, %arg7: memref<1x128xf32, #tpu.memory_space<vmem>>, %arg8: memref<8x128xf32, #tpu.memory_space<vmem>>) attributes {dimension_semantics = [#tpu.dimension_semantics<parallel>], iteration_bounds = array<i64: 1>, scalar_prefetch = 0 : i64, scratch_operands = 0 : i64, tpu.core_type = #tpu.core_type<tc>, window_params = [{transform_indices = @transform_0, window_bounds = array<i64: 8, 32>}, {pipeline_mode = #tpu.pipeline_mode<synchronous>, transform_indices = @transform_1, window_bounds = array<i64: 32, 512>}, {pipeline_mode = #tpu.pipeline_mode<synchronous>, transform_indices = @transform_2, window_bounds = array<i64: 1, 512>}, {pipeline_mode = #tpu.pipeline_mode<synchronous>, transform_indices = @transform_3, window_bounds = array<i64: 512, 256>}, {pipeline_mode = #tpu.pipeline_mode<synchronous>, transform_indices = @transform_4, window_bounds = array<i64: 1, 256>}, {pipeline_mode = #tpu.pipeline_mode<synchronous>, transform_indices = @transform_5, window_bounds = array<i64: 256, 128>}, {pipeline_mode = #tpu.pipeline_mode<synchronous>, transform_indices = @transform_6, window_bounds = array<i64: 1, 128>}, {transform_indices = @transform_7, window_bounds = array<i64: 8, 128>}]} {
    %c0 = arith.constant 0 : index
    %c0_0 = arith.constant 0 : index
    %0 = vector.load %arg1[%c0, %c0_0] : memref<8x32xbf16, #tpu.memory_space<vmem>>, vector<8x32xbf16>
    %c0_1 = arith.constant 0 : index
    %c0_2 = arith.constant 0 : index
    %1 = vector.load %arg2[%c0_1, %c0_2] : memref<32x512xbf16, #tpu.memory_space<vmem>>, vector<32x512xbf16>
    %cst = arith.constant dense<0.000000e+00> : vector<8x512xf32>
    %2 = tpu.matmul %0, %1, %cst {dimension_numbers = #tpu.dot_dimension_numbers<[1], [0], [0], [1], [0, 0, 1, 1], [], []>} : vector<8x32xbf16>, vector<32x512xbf16>, vector<8x512xf32> -> vector<8x512xf32>
    %c0_3 = arith.constant 0 : index
    %c0_4 = arith.constant 0 : index
    %3 = vector.load %arg3[%c0_3, %c0_4] : memref<1x512xf32, #tpu.memory_space<vmem>>, vector<1x512xf32>
    %4 = vector.broadcast %3 : vector<1x512xf32> to vector<8x512xf32>
    %5 = arith.addf %2, %4 : vector<8x512xf32>
    %cst_5 = arith.constant 0.000000e+00 : f32
    %6 = vector.broadcast %cst_5 : f32 to vector<8x512xf32>
    %7 = arith.maximumf %5, %6 : vector<8x512xf32>
    %8 = arith.truncf %7 : vector<8x512xf32> to vector<8x512xbf16>
    %c0_6 = arith.constant 0 : index
    %c0_7 = arith.constant 0 : index
    %9 = vector.load %arg4[%c0_6, %c0_7] : memref<512x256xbf16, #tpu.memory_space<vmem>>, vector<512x256xbf16>
    %cst_8 = arith.constant dense<0.000000e+00> : vector<8x256xf32>
    %10 = tpu.matmul %8, %9, %cst_8 {dimension_numbers = #tpu.dot_dimension_numbers<[1], [0], [0], [1], [0, 0, 1, 1], [], []>} : vector<8x512xbf16>, vector<512x256xbf16>, vector<8x256xf32> -> vector<8x256xf32>
    %c0_9 = arith.constant 0 : index
    %c0_10 = arith.constant 0 : index
    %11 = vector.load %arg5[%c0_9, %c0_10] : memref<1x256xf32, #tpu.memory_space<vmem>>, vector<1x256xf32>
    %12 = vector.broadcast %11 : vector<1x256xf32> to vector<8x256xf32>
    %13 = arith.addf %10, %12 : vector<8x256xf32>
    %cst_11 = arith.constant 0.000000e+00 : f32
    %14 = vector.broadcast %cst_11 : f32 to vector<8x256xf32>
    %15 = arith.maximumf %13, %14 : vector<8x256xf32>
    %16 = arith.truncf %15 : vector<8x256xf32> to vector<8x256xbf16>
    %c0_12 = arith.constant 0 : index
    %c0_13 = arith.constant 0 : index
    %17 = vector.load %arg6[%c0_12, %c0_13] : memref<256x128xbf16, #tpu.memory_space<vmem>>, vector<256x128xbf16>
    %cst_14 = arith.constant dense<0.000000e+00> : vector<8x128xf32>
    %18 = tpu.matmul %16, %17, %cst_14 {dimension_numbers = #tpu.dot_dimension_numbers<[1], [0], [0], [1], [0, 0, 1, 1], [], []>} : vector<8x256xbf16>, vector<256x128xbf16>, vector<8x128xf32> -> vector<8x128xf32>
    %c0_15 = arith.constant 0 : index
    %c0_16 = arith.constant 0 : index
    %19 = vector.load %arg7[%c0_15, %c0_16] : memref<1x128xf32, #tpu.memory_space<vmem>>, vector<1x128xf32>
    %20 = vector.broadcast %19 : vector<1x128xf32> to vector<8x128xf32>
    %21 = arith.addf %18, %20 : vector<8x128xf32>
    %c0_17 = arith.constant 0 : index
    %c0_18 = arith.constant 0 : index
    %22 = vector.load %arg8[%c0_17, %c0_18] : memref<8x128xf32, #tpu.memory_space<vmem>>, vector<8x128xf32>
    tpu.vector_store %arg8[%c0_17, %c0_18], %21 {strides = array<i32>} : memref<8x128xf32, #tpu.memory_space<vmem>>, vector<8x128xf32>,
    return
  }
  func.func @transform_0(%arg0: i32) -> (i32, i32) {
    %c0_i32 = arith.constant 0 : i32
    %c0_i32_0 = arith.constant 0 : i32
    return %arg0, %c0_i32 : i32, i32
  }
  func.func @transform_1(%arg0: i32) -> (i32, i32) {
    %c0_i32 = arith.constant 0 : i32
    %c0_i32_0 = arith.constant 0 : i32
    %c0_i32_1 = arith.constant 0 : i32
    return %c0_i32, %c0_i32_0 : i32, i32
  }
  func.func @transform_2(%arg0: i32) -> (i32, i32) {
    %c0_i32 = arith.constant 0 : i32
    %c0_i32_0 = arith.constant 0 : i32
    %c0_i32_1 = arith.constant 0 : i32
    return %c0_i32, %c0_i32_0 : i32, i32
  }
  func.func @transform_3(%arg0: i32) -> (i32, i32) {
    %c0_i32 = arith.constant 0 : i32
    %c0_i32_0 = arith.constant 0 : i32
    %c0_i32_1 = arith.constant 0 : i32
    return %c0_i32, %c0_i32_0 : i32, i32
  }
  func.func @transform_4(%arg0: i32) -> (i32, i32) {
    %c0_i32 = arith.constant 0 : i32
    %c0_i32_0 = arith.constant 0 : i32
    %c0_i32_1 = arith.constant 0 : i32
    return %c0_i32, %c0_i32_0 : i32, i32
  }
  func.func @transform_5(%arg0: i32) -> (i32, i32) {
    %c0_i32 = arith.constant 0 : i32
    %c0_i32_0 = arith.constant 0 : i32
    %c0_i32_1 = arith.constant 0 : i32
    return %c0_i32, %c0_i32_0 : i32, i32
  }
  func.func @transform_6(%arg0: i32) -> (i32, i32) {
    %c0_i32 = arith.constant 0 : i32
    %c0_i32_0 = arith.constant 0 : i32
    %c0_i32_1 = arith.constant 0 : i32
    return %c0_i32, %c0_i32_0 : i32, i32
  }
  func.func @transform_7(%arg0: i32) -> (i32, i32) {
    %c0_i32 = arith.constant 0 : i32
    %c0_i32_0 = arith.constant 0 : i32
    return %arg0, %c0_i32 : i32, i32
  }
}

</mosaic_0001>

<bundles_post_ra>
// kernel: tpu_custom_call.1
= control target key start
LH: loop header
LB: loop body
LE: loop exit
PB: predicated region body
PF: predicated region fallthrough
CT: control target
= control target key end

     0   :  { %12 = vsyncpa [#allocation3], 0  ;;  %s1403_s0 = inlined_call_operand.hbm [shape: bf16[8,32], index: 0, kind: input, shape index: {}]   ;;  %s1404_s1 = inlined_call_operand.hbm [shape: bf16[32,512], index: 1, kind: input, shape index: {}]   ;;  %s1405_s2 = inlined_call_operand.hbm [shape: f32[1,512], index: 2, kind: input, shape index: {}]   ;;  %s1406_s3 = inlined_call_operand.hbm [shape: bf16[512,256], index: 3, kind: input, shape index: {}]   ;;  %s1407_s4 = inlined_call_operand.vmem [shape: f32[1,256], index: 4, kind: input, shape index: {}]   ;;  %s1408_s5 = inlined_call_operand.hbm [shape: bf16[256,128], index: 5, kind: input, shape index: {}]   ;;  %s1409_s6 = inlined_call_operand.vmem [shape: f32[1,128], index: 6, kind: input, shape index: {}]   ;;  %s1410_s7 = inlined_call_operand.hbm [shape: f32[8,128], index: 7, kind: output, shape index: {}]  }
   0x1   :  { %13 = vsyncpa [#allocation6], 0 }
   0x2   :  { %14 = vsyncpa [#allocation9], 0 }
   0x3   :  { %15 = vsyncpa [#allocation4], 0  ;;  %s1310_s24 = smov [#allocation5]  }
   0x4   :  { %s31_s25 = sshll.u32 %s1310_s24, 4  ;;  %s32_s25 = int_to_ptr.vmem [resolvable:$true] %s31_s25 }
   0x5   :  { %s1190_s26 = scalar_lea.vmem %s32_s25, 1024  ;;  %p1195_p1 = scmp.lt.s32.totalorder %s32_s25, %s32_s25 }
   0x6   :  { %p1191_p0 = scmp.ne.s32.totalorder %s32_s25, %s1190_s26  ;;  %p1196_p2 = scmp.lt.s32.totalorder %s1190_s26, %s1190_s26 }
   0x8   :  { %p1197_p3 = por %p1196_p2, %p1195_p1 }
   0xa   :  { %p1198_p4 = pnand %p1197_p3, %p1191_p0 }
   0xc   :  { %1201 = shalt.err (!%p1198_p4)
}
   0xd   :  { %s1311_s27 = smov 256   ;;  %s1312_s28 = smov 16  }
   0xe   :  { %37 = dma.hbm_to_vmem [thread:$0]  %s1404_s1, 1024, %s32_s25, [#allocation6], %s1311_s27, %s1311_s27, %s1312_s28  }
   0xf   :  { %s1313_s8 = smov [#allocation8]  }
  0x10   :  { %s53_s9 = sshll.u32 %s1313_s8, 4  ;;  %s54_s9 = int_to_ptr.vmem [resolvable:$true] %s53_s9 }
  0x11   :  { %s1210_s10 = scalar_lea.vmem %s54_s9, 8192  ;;  %p1215_p6 = scmp.lt.s32.totalorder %s54_s9, %s54_s9 }
  0x12   :  { %p1211_p5 = scmp.ne.s32.totalorder %s54_s9, %s1210_s10  ;;  %p1216_p7 = scmp.lt.s32.totalorder %s1210_s10, %s1210_s10 }
  0x14   :  { %p1217_p8 = por %p1216_p7, %p1215_p6 }
  0x16   :  { %p1218_p9 = pnand %p1217_p8, %p1211_p5 }
  0x18   :  { %1221 = shalt.err (!%p1218_p9)
}
  0x19   :  { %s1314_s11 = smov 128   ;;  %s1315_s12 = smov 8  }
  0x1a   :  { %59 = dma.hbm_to_vmem [thread:$0]  %s1406_s3, 8192, %s54_s9, [#allocation9], %s1314_s11, %s1314_s11, %s1315_s12  }
  0x1b   :  { %s1316_s15 = smov [#allocation2]   ;;  %s1317_s17 = smov [#allocation7]  }
  0x1c   :  { %s22_s16 = sshll.u32 %s1316_s15, 4  ;;  %s44_s1 = sshll.u32 %s1317_s17, 4  ;;  %s23_s16 = int_to_ptr.vmem [resolvable:$true] %s22_s16  ;;  %s45_s1 = int_to_ptr.vmem [resolvable:$true] %s44_s1 }
  0x1d   :  { %s1230_s18 = scalar_lea.vmem %s23_s16, 64  ;;  %p1235_p11 = scmp.lt.s32.totalorder %s23_s16, %s23_s16 }
  0x1e   :  { %p1231_p10 = scmp.ne.s32.totalorder %s23_s16, %s1230_s18  ;;  %p1236_p12 = scmp.lt.s32.totalorder %s1230_s18, %s1230_s18 }
  0x20   :  { %p1237_p13 = por %p1236_p12, %p1235_p11 }
  0x22   :  { %p1238_p0 = pnand %p1237_p13, %p1231_p10 }
  0x24   :  { %1241 = shalt.err (!%p1238_p0)
}
  0x25   :  { %25 = dma.hbm_to_vmem [thread:$0]  %s1403_s0, 64, %s23_s16, [#allocation3]  }
  0x26   :  { %s1250_s21 = scalar_lea.vmem %s45_s1, 64  ;;  %p1255_p2 = scmp.lt.s32.totalorder %s45_s1, %s45_s1 }
  0x27   :  { %p1251_p1 = scmp.ne.s32.totalorder %s45_s1, %s1250_s21  ;;  %p1256_p3 = scmp.lt.s32.totalorder %s1250_s21, %s1250_s21 }
  0x29   :  { %p1257_p4 = por %p1256_p3, %p1255_p2 }
  0x2b   :  { %p1258_p5 = pnand %p1257_p4, %p1251_p1 }
  0x2d   :  { %1261 = shalt.err (!%p1258_p5)
}
  0x2e   :  { %47 = dma.hbm_to_vmem [thread:$0]  %s1405_s2, 64, %s45_s1, [#allocation6]  }
  0x2f   :  { %s1318_s23 = smov [#allocation10]  }
  0x30   :  { %s67_s24 = sshll.u32 %s1318_s23, 4  ;;  %s68_s24 = int_to_ptr.vmem [resolvable:$true] %s67_s24 }
  0x31   :  { %s1270_s25 = scalar_lea.vmem %s68_s24, 2048  ;;  %p1275_p7 = scmp.lt.s32.totalorder %s68_s24, %s68_s24 }
  0x32   :  { %p1271_p6 = scmp.ne.s32.totalorder %s68_s24, %s1270_s25  ;;  %p1276_p8 = scmp.lt.s32.totalorder %s1270_s25, %s1270_s25 }
  0x34   :  { %p1277_p9 = por %p1276_p8, %p1275_p7 }
  0x36   :  { %p1278_p10 = pnand %p1277_p9, %p1271_p6 }
  0x38   :  { %1281 = shalt.err (!%p1278_p10)
}
  0x39   :  { %s1319_s0 = smov 64   ;;  %s1320_s26 = smov 4  }
  0x3a   :  { %73 = dma.hbm_to_vmem [thread:$0]  %s1408_s5, 2048, %s68_s24, [#allocation9], %s1319_s0, %s1319_s0, %s1320_s26  }
  0x3b   :  { %1302 = dma.done.wait [#allocation3], 64  }
  0x3c   :  { %1303 = vsyncadd [#allocation3], 4294967232 }
  0x3d   :  { %1304 = dma.done.wait [#allocation6], 1088  }
  0x3e   :  { %1305 = vsyncadd [#allocation6], 4294966208 }
  0x3f   :  { %1306 = dma.done.wait [#allocation9], 10240  }
  0x40   :  { %1307 = vsyncadd [#allocation9], 4294957056  ;;  %v1321_v0 = vmov 0   ;;  %v1058_v1 = vld [vmem:[#allocation5 + $0x24] ss:$16 sps:$4 sm:$0xff]   ;;  %vm163_vm0 = vcmask 261120  }
  0x41   :  { %199 = vmatprep.mubr.bf16.mxu1 %v1321_v0  ;;  %v1060_v2 = vld [vmem:[#allocation5 + $0x20] ss:$16 sps:$4 sm:$0xff]   ;;  %179 = vmatprep.subr.bf16.mxu1 %v1058_v1  ;;  %v1061_v3 = vld [vmem:[#allocation5 + $0x4] ss:$16 sps:$4 sm:$0xff]   ;;  %v1066_v5 = vld [vmem:[#allocation5 + $0x2c] ss:$16 sps:$4 sm:$0xff]  }
  0x42   :  { %180 = vmatpush1.bf16.msra.mxu1 %v1060_v2  ;;  %v1063_v4 = vld [vmem:[#allocation5] ss:$16 sps:$4 sm:$0xff]   ;;  %v92_v6 = vld [vmem:[#allocation2] sm:$0xf]  ;;  %v1064_v7 = vld [vmem:[#allocation5 + $0x28] ss:$16 sps:$4 sm:$0xff]  }
  0x43   :  { %181 = vmatprep.subr.bf16.mxu1 %v1061_v3  ;;  %v1070_v8 = vld [vmem:[#allocation8 + $0x74] ss:$8 sps:$4 sm:$0xff]   ;;  %v1072_v9 = vld [vmem:[#allocation8 + $0x70] ss:$8 sps:$4 sm:$0xff]   ;;  %v1073_v10 = vld [vmem:[#allocation8 + $0x64] ss:$8 sps:$4 sm:$0xff]  }
  0x44   :  { %v1069_v11 = vld [vmem:[#allocation5 + $0xc] ss:$16 sps:$4 sm:$0xff]   ;;  %653 = vmatprep.subr.bf16.mxu0 %v1070_v8  ;;  %v1076_v13 = vld [vmem:[#allocation8 + $0x54] ss:$8 sps:$4 sm:$0xff]   ;;  %v1082_v17 = vld [vmem:[#allocation8 + $0x44] ss:$8 sps:$4 sm:$0xff]  }
  0x45   :  { %654 = vmatpush1.bf16.msra.mxu0 %v1072_v9  ;;  %v1075_v12 = vld [vmem:[#allocation8 + $0x60] ss:$8 sps:$4 sm:$0xff]   ;;  %v1067_v14 = vld [vmem:[#allocation5 + $0x8] ss:$16 sps:$4 sm:$0xff]   ;;  %v1081_v16 = vld [vmem:[#allocation8 + $0x50] ss:$8 sps:$4 sm:$0xff]  }
  0x46   :  { %182 = vmatpush1.bf16.msra.mxu1 %v1063_v4  ;;  %655 = vmatprep.subr.bf16.mxu0 %v1073_v10  ;;  %v1080_v15 = vld [vmem:[#allocation8 + $0x174] ss:$8 sps:$4 sm:$0xff]   ;;  %v1078_v18 = vld [vmem:[#allocation8 + $0x170] ss:$8 sps:$4 sm:$0xff]   ;;  %v1086_v19 = vld [vmem:[#allocation8 + $0x164] ss:$8 sps:$4 sm:$0xff]  }
  0x47   :  { %220 = vmatprep.subr.bf16.mxu1 %v1066_v5  ;;  %v1087_v20 = vld [vmem:[#allocation8 + $0x40] ss:$8 sps:$4 sm:$0xff]   ;;  %v1088_v21 = vld [vmem:[#allocation8 + $0x34] ss:$8 sps:$4 sm:$0xff]   ;;  %v1093_v24 = vld [vmem:[#allocation8 + $0x30] ss:$8 sps:$4 sm:$0xff]  }
  0x48   :  { %v1084_v22 = vld [vmem:[#allocation8 + $0x160] ss:$8 sps:$4 sm:$0xff]   ;;  %v1092_v23 = vld [vmem:[#allocation8 + $0x154] ss:$8 sps:$4 sm:$0xff]   ;;  %v1094_v25 = vld [vmem:[#allocation8 + $0x24] ss:$8 sps:$4 sm:$0xff]  }
  0x49   :  { %940 = vmatmul.mubr.msk.bf16.vlgmr.msra.gmra.mxu1 %vm163_vm0, %v92_v6  ;;  %656 = vmatpush1.bf16.msra.mxu0 %v1075_v12  ;;  %v1090_v26 = vld [vmem:[#allocation8 + $0x150] ss:$8 sps:$4 sm:$0xff]   ;;  %v1098_v27 = vld [vmem:[#allocation8 + $0x144] ss:$8 sps:$4 sm:$0xff]   ;;  %v1099_v28 = vld [vmem:[#allocation8 + $0x20] ss:$8 sps:$4 sm:$0xff]  }
  0x4a   :  { %221 = vmatpush1.bf16.msra.mxu1 %v1064_v7  ;;  %240 = vmatprep.mubr.bf16.mxu1 %v1321_v0  ;;  %v1100_v29 = vld [vmem:[#allocation8 + $0x14] ss:$8 sps:$4 sm:$0xff]   ;;  %v1096_v30 = vld [vmem:[#allocation8 + $0x140] ss:$8 sps:$4 sm:$0xff]   ;;  %v1105_v32 = vld [vmem:[#allocation8 + $0x10] ss:$8 sps:$4 sm:$0xff]  }
  0x4b   :  { %222 = vmatprep.subr.bf16.mxu1 %v1069_v11  ;;  %657 = vmatprep.subr.bf16.mxu0 %v1076_v13  ;;  %v1104_v31 = vld [vmem:[#allocation8 + $0x134] ss:$8 sps:$4 sm:$0xff]   ;;  %v1106_v33 = vld [vmem:[#allocation8 + $0x4] ss:$8 sps:$4 sm:$0xff]   ;;  %v1102_v34 = vld [vmem:[#allocation8 + $0x130] ss:$8 sps:$4 sm:$0xff]   ;;  %v103_v11 = vlaneseq }
  0x4c   :  { %v1110_v35 = vld [vmem:[#allocation8 + $0x124] ss:$8 sps:$4 sm:$0xff]   ;;  %v1111_v36 = vld [vmem:[#allocation8] ss:$8 sps:$4 sm:$0xff]   ;;  %v1112_v37 = vld [vmem:[#allocation8 + $0xf4] ss:$8 sps:$4 sm:$0xff]  }
  0x4d   :  { %658 = vmatpush1.bf16.msra.mxu0 %v1081_v16  ;;  %v1108_v38 = vld [vmem:[#allocation8 + $0x120] ss:$8 sps:$4 sm:$0xff]   ;;  %v1116_v39 = vld [vmem:[#allocation8 + $0x114] ss:$8 sps:$4 sm:$0xff]   ;;  %v1117_v40 = vld [vmem:[#allocation8 + $0xf0] ss:$8 sps:$4 sm:$0xff]  }
  0x4e   :  { %223 = vmatpush1.bf16.msra.mxu1 %v1067_v14  ;;  %659 = vmatprep.subr.bf16.mxu0 %v1082_v17  ;;  %v1118_v41 = vld [vmem:[#allocation8 + $0xe4] ss:$8 sps:$4 sm:$0xff]   ;;  %v1114_v42 = vld [vmem:[#allocation8 + $0x110] ss:$8 sps:$4 sm:$0xff]   ;;  %v1123_v44 = vld [vmem:[#allocation8 + $0xe0] ss:$8 sps:$4 sm:$0xff]  }
  0x4f   :  { %694 = vmatprep.subr.bf16.mxu1 %v1080_v15  ;;  %v1122_v43 = vld [vmem:[#allocation8 + $0x104] ss:$8 sps:$4 sm:$0xff]   ;;  %v1124_v45 = vld [vmem:[#allocation8 + $0xd4] ss:$8 sps:$4 sm:$0xff]   ;;  %v1120_v46 = vld [vmem:[#allocation8 + $0x100] ss:$8 sps:$4 sm:$0xff]  }
  0x50   :  { %v1128_v47 = vld [vmem:[#allocation8 + $0x1f4] ss:$8 sps:$4 sm:$0xff]   ;;  %v1129_v48 = vld [vmem:[#allocation8 + $0xd0] ss:$8 sps:$4 sm:$0xff]   ;;  %v1130_v49 = vld [vmem:[#allocation8 + $0xc4] ss:$8 sps:$4 sm:$0xff]  }
  0x51   :  { %941 = vmatmul.mubr.msk.bf16.vlgmr.msra.gmra.mxu1 %vm163_vm0, %v92_v6  ;;  %660 = vmatpush1.bf16.msra.mxu0 %v1087_v20  ;;  %v1126_v50 = vld [vmem:[#allocation8 + $0x1f0] ss:$8 sps:$4 sm:$0xff]   ;;  %v1134_v51 = vld [vmem:[#allocation8 + $0x1e4] ss:$8 sps:$4 sm:$0xff]   ;;  %v1135_v52 = vld [vmem:[#allocation8 + $0xc0] ss:$8 sps:$4 sm:$0xff]  }
  0x52   :  { %695 = vmatpush1.bf16.msra.mxu1 %v1078_v18  ;;  %661 = vmatprep.subr.bf16.mxu0 %v1088_v21  ;;  %v1136_v53 = vld [vmem:[#allocation8 + $0xb4] ss:$8 sps:$4 sm:$0xff]   ;;  %v1132_v54 = vld [vmem:[#allocation8 + $0x1e0] ss:$8 sps:$4 sm:$0xff]   ;;  %v1141_v56 = vld [vmem:[#allocation8 + $0xb0] ss:$8 sps:$4 sm:$0xff]  }
  0x53   :  { %696 = vmatprep.subr.bf16.mxu1 %v1086_v19  ;;  %v1140_v55 = vld [vmem:[#allocation8 + $0x1d4] ss:$8 sps:$4 sm:$0xff]   ;;  %v1142_v57 = vld [vmem:[#allocation8 + $0xa4] ss:$8 sps:$4 sm:$0xff]   ;;  %v1138_v58 = vld [vmem:[#allocation8 + $0x1d0] ss:$8 sps:$4 sm:$0xff]  }
  0x54   :  { %v1146_v59 = vld [vmem:[#allocation8 + $0x1c4] ss:$8 sps:$4 sm:$0xff]   ;;  %v1147_v60 = vld [vmem:[#allocation8 + $0xa0] ss:$8 sps:$4 sm:$0xff]   ;;  %v1148_v62 = vld [vmem:[#allocation8 + $0x94] ss:$8 sps:$4 sm:$0xff]  }
  0x55   :  { %662 = vmatpush1.bf16.msra.mxu0 %v1093_v24  ;;  %v1144_v61 = vld [vmem:[#allocation8 + $0x1c0] ss:$8 sps:$4 sm:$0xff]   ;;  %v1152_v63 = vld [vmem:[#allocation8 + $0x1b4] ss:$8 sps:$4 sm:$0xff]   ;;  %v1150_v0 = vld [vmem:[#allocation8 + $0x1b0] ss:$8 sps:$4 sm:$0xff]  }
  0x56   :  { %697 = vmatpush1.bf16.msra.mxu1 %v1084_v22  ;;  %663 = vmatprep.subr.bf16.mxu0 %v1094_v25  ;;  %v1153_v1 = vld [vmem:[#allocation8 + $0x90] ss:$8 sps:$4 sm:$0xff]   ;;  %v1154_v2 = vld [vmem:[#allocation8 + $0x84] ss:$8 sps:$4 sm:$0xff]   ;;  %v1156_v4 = vld [vmem:[#allocation8 + $0x1a0] ss:$8 sps:$4 sm:$0xff]  }
  0x57   :  { %698 = vmatprep.subr.bf16.mxu1 %v1092_v23  ;;  %v1158_v3 = vld [vmem:[#allocation8 + $0x1a4] ss:$8 sps:$4 sm:$0xff]   ;;  %v1159_v5 = vld [vmem:[#allocation8 + $0x80] ss:$8 sps:$4 sm:$0xff]   ;;  %v1162_v6 = vld [vmem:[#allocation8 + $0x194] ss:$8 sps:$4 sm:$0xff]  }
  0x58   :  { %v1160_v7 = vld [vmem:[#allocation8 + $0x190] ss:$8 sps:$4 sm:$0xff]   ;;  %v1165_v8 = vld [vmem:[#allocation8 + $0x184] ss:$8 sps:$4 sm:$0xff]   ;;  %v1163_v9 = vld [vmem:[#allocation8 + $0x180] ss:$8 sps:$4 sm:$0xff]  }
  0x59   :  { %664 = vmatpush1.bf16.msra.mxu0 %v1099_v28  ;;  %v1166_v10 = vld [vmem:[#allocation10 + $0x78] sm:$0xff]   ;;  %v1380_v12 = vshrl.u32 %v103_v11, 7  ;;  %s1322_s30 = smov [#allocation11]  }
  0x5a   :  { %699 = vmatpush1.bf16.msra.mxu1 %v1090_v26  ;;  %665 = vmatprep.subr.bf16.mxu0 %v1100_v29  ;;  %v101_v14 = vld [vmem:[#allocation7] sm:$0xf]  ;;  %s921_s8 = sshll.u32 %s1322_s30, 4  ;;  %s922_s8 = int_to_ptr.vmem [resolvable:$true] %s921_s8 }
  0x5b   :  { %700 = vmatprep.subr.bf16.mxu1 %v1098_v27  ;;  %v105_v13 = vsub.s32 0, %v1380_v12  ;;  %v109_v15 = vsub.s32 1, %v1380_v12  ;;  %v113_v20 = vsub.s32 2, %v1380_v12  ;;  %v117_v23 = vsub.s32 3, %v1380_v12  ;;  %v1006_v12 = vld [vmem:[%s1409_s6] ss:$0 sm:$0xff]  ;;  %p1287_p12 = scmp.lt.s32.totalorder %s922_s8, %s922_s8 }
  0x5c   :  { %s1282_s9 = scalar_lea.vmem %s922_s8, 128 }
  0x5d   :  { %666 = vmatpush1.bf16.msra.mxu0 %v1105_v32  ;;  %v106_v16 = vrot.slane %v101_v14, %v105_v13  ;;  %v110_v17 = vrot.slane %v101_v14, %v109_v15  ;;  %v114_v26 = vrot.slane %v101_v14, %v113_v20  ;;  %p1283_p11 = scmp.ne.s32.totalorder %s922_s8, %s1282_s9  ;;  %p1288_p13 = scmp.lt.s32.totalorder %s1282_s9, %s1282_s9 }
  0x5e   :  { %701 = vmatpush1.bf16.msra.mxu1 %v1096_v30  ;;  %667 = vmatprep.subr.bf16.mxu0 %v1106_v33  ;;  %v118_v30 = vrot.slane %v101_v14, %v117_v23 }
  0x5f   :  { %702 = vmatprep.subr.bf16.mxu1 %v1104_v31  ;;  %v1167_v31 = vld [vmem:[#allocation10 + $0x38] sm:$0xff]   ;;  %p1289_p0 = por %p1288_p13, %p1287_p12 }
  0x61   :  { %668 = vmatpush1.bf16.msra.mxu0 %v1111_v36  ;;  %p1290_p1 = pnand %p1289_p0, %p1283_p11 }
  0x62   :  { %703 = vmatpush1.bf16.msra.mxu1 %v1102_v34  ;;  %669 = vmatprep.subr.bf16.mxu0 %v1112_v37  ;;  %v1168_v34 = vld [vmem:[#allocation10 + $0x70] sm:$0xff]  }
  0x63   :  { %704 = vmatprep.subr.bf16.mxu1 %v1110_v35 }
  0x65   :  { %670 = vmatpush2.bf16.msra.mxu0 %v1117_v40 }
  0x66   :  { %705 = vmatpush1.bf16.msra.mxu1 %v1108_v38  ;;  %671 = vmatprep.subr.bf16.mxu0 %v1118_v41  ;;  %v1169_v38 = vld [vmem:[#allocation10 + $0x30] sm:$0xff]   ;;  %v1170_v41 = vld [vmem:[#allocation10 + $0x68] sm:$0xff]  }
  0x67   :  { %706 = vmatprep.subr.bf16.mxu1 %v1116_v39 }
  0x69   :  { %672 = vmatpush2.bf16.msra.mxu0 %v1123_v44 }
  0x6a   :  { %707 = vmatpush1.bf16.msra.mxu1 %v1114_v42  ;;  %673 = vmatprep.subr.bf16.mxu0 %v1124_v45  ;;  %v1171_v45 = vld [vmem:[#allocation10 + $0x28] sm:$0xff]  }
  0x6b   :  { %708 = vmatprep.subr.bf16.mxu1 %v1122_v43 }
  0x6d   :  { %674 = vmatpush2.bf16.msra.mxu0 %v1129_v48  ;;  %v1173_v48 = vld [vmem:[#allocation10 + $0x20] sm:$0xff]  }
  0x6e   :  { %709 = vmatpush1.bf16.msra.mxu1 %v1120_v46  ;;  %675 = vmatprep.subr.bf16.mxu0 %v1130_v49  ;;  %v1174_v49 = vld [vmem:[#allocation10 + $0x58] sm:$0xff]  }
  0x6f   :  { %710 = vmatprep.subr.bf16.mxu1 %v1128_v47  ;;  %v1172_v47 = vld [vmem:[#allocation10 + $0x60] sm:$0xff]  }
  0x71   :  { %676 = vmatpush2.bf16.msra.mxu0 %v1135_v52  ;;  %v1177_v52 = vld [vmem:[#allocation10 + $0x10] sm:$0xff]  }
  0x72   :  { %711 = vmatpush2.bf16.msra.mxu1 %v1126_v50  ;;  %677 = vmatprep.subr.bf16.mxu0 %v1136_v53  ;;  %v1175_v50 = vld [vmem:[#allocation10 + $0x18] sm:$0xff]   ;;  %v1178_v53 = vld [vmem:[#allocation10 + $0x48] sm:$0xff]  }
  0x73   :  { %712 = vmatprep.subr.bf16.mxu1 %v1134_v51  ;;  %v1176_v51 = vld [vmem:[#allocation10 + $0x50] sm:$0xff]  }
  0x75   :  { %678 = vmatpush2.bf16.msra.mxu0 %v1141_v56  ;;  %v1181_v56 = vld [vmem:[#allocation10] sm:$0xff]  }
  0x76   :  { %713 = vmatpush2.bf16.msra.mxu1 %v1132_v54  ;;  %679 = vmatprep.subr.bf16.mxu0 %v1142_v57  ;;  %v1179_v54 = vld [vmem:[#allocation10 + $0x8] sm:$0xff]   ;;  %v321_v57 = vld [vmem:[%s1407_s4] sm:$0x3] }
  0x77   :  { %714 = vmatprep.subr.bf16.mxu1 %v1140_v55  ;;  %v1180_v55 = vld [vmem:[#allocation10 + $0x40] sm:$0xff]  }
  0x79   :  { %680 = vmatpush2.bf16.msra.mxu0 %v1147_v60  ;;  %v326_v60 = vrot.slane %v321_v57, %v105_v13 }
  0x7a   :  { %715 = vmatpush2.bf16.msra.mxu1 %v1138_v58  ;;  %681 = vmatprep.subr.bf16.mxu0 %v1148_v62  ;;  %v330_v62 = vrot.slane %v321_v57, %v109_v15 }
  0x7b   :  { %716 = vmatprep.subr.bf16.mxu1 %v1146_v59 }
  0x7d   :  { %682 = vmatpush2.bf16.msra.mxu0 %v1153_v1 }
  0x7e   :  { %717 = vmatpush2.bf16.msra.mxu1 %v1144_v61  ;;  %683 = vmatprep.subr.bf16.mxu0 %v1154_v2 }
  0x7f   :  { %718 = vmatprep.subr.bf16.mxu1 %v1152_v63 }
  0x81   :  { %684 = vmatpush2.bf16.msra.mxu0 %v1159_v5 }
  0x82   :  { %719 = vmatpush2.bf16.msra.mxu1 %v1150_v0  ;;  %1023 = vmatprep.subr.bf16.mxu0 %v1166_v10 }
  0x83   :  { %720 = vmatprep.subr.bf16.mxu1 %v1158_v3 }
  0x86   :  { %721 = vmatpush2.bf16.msra.mxu1 %v1156_v4 }
  0x87   :  { %722 = vmatprep.subr.bf16.mxu1 %v1162_v6 }
  0x8a   :  { %723 = vmatpush2.bf16.msra.mxu1 %v1160_v7 }
  0x8b   :  { %724 = vmatprep.subr.bf16.mxu1 %v1165_v8 }
  0x8e   :  { %725 = vmatpush2.bf16.msra.mxu1 %v1163_v9 }
 0x109   :  { %v201_v18 = vpop.f32.mrf.mxu1 }
 0x10a   :  { %v202_v19 = vadd.f32 %v201_v18, %v106_v16 }
 0x10b   :  { %v203_v21 = vpop.f32.mrf.mxu1 }
 0x10c   :  { %v204_v22 = vadd.f32 %v203_v21, %v110_v17  ;;  %v249_v24 = vmax.f32 %v202_v19, 0.0 }
 0x10d   :  { %v205_v25 = vpop.f32.mrf.mxu1 }
 0x10e   :  { %v250_v27 = vmax.f32 %v204_v22, 0.0  ;;  %v253_v32 = vpack.c.bf16 %v249_v24, %v249_v24 }
 0x10f   :  { %v206_v28 = vpop.f32.mrf.mxu1 }
 0x110   :  { %v254_v29 = vpack.c.bf16 %v250_v27, %v250_v27 }
 0x111   :  { %v242_v33 = vpop.f32.mrf.mxu1 }
 0x112   :  { %v243_v35 = vadd.f32 %v242_v33, %v114_v26  ;;  %685 = vmatprep.mubr.bf16.mxu0 %v254_v29 }
 0x113   :  { %v244_v36 = vpop.f32.mrf.mxu1  ;;  %686 = vmatmul.mubr.bf16.vlgmr.msra.gmra.mxu0 %v253_v32 }
 0x114   :  { %v245_v37 = vadd.f32 %v244_v36, %v118_v30  ;;  %1024 = vmatpush3.bf16.msra.mxu0 %v1167_v31  ;;  %v251_v39 = vmax.f32 %v243_v35, 0.0 }
 0x115   :  { %v246_v40 = vpop.f32.mrf.mxu1  ;;  %1025 = vmatprep.subr.bf16.mxu0 %v1168_v34 }
 0x116   :  { %v252_v42 = vmax.f32 %v245_v37, 0.0  ;;  %v255_v46 = vpack.c.bf16 %v251_v39, %v251_v39 }
 0x117   :  { %v247_v43 = vpop.f32.mrf.mxu1 }
 0x118   :  { %v256_v44 = vpack.c.bf16 %v252_v42, %v252_v42  ;;  %1026 = vmatpush3.bf16.msra.mxu0 %v1169_v38 }
 0x119   :  { %1027 = vmatprep.subr.bf16.mxu0 %v1170_v41 }
 0x11a   :  { %726 = vmatprep.mubr.bf16.mxu1 %v256_v44 }
 0x11b   :  { %727 = vmatmul.mubr.bf16.vlgmr.msra.gmra.mxu1 %v255_v46 }
 0x11c   :  { %1028 = vmatpush3.bf16.msra.mxu0 %v1171_v45 }
 0x11d   :  { %1029 = vmatprep.subr.bf16.mxu0 %v1172_v47 }
 0x120   :  { %1030 = vmatpush3.bf16.msra.mxu0 %v1173_v48 }
 0x121   :  { %1031 = vmatprep.subr.bf16.mxu0 %v1174_v49 }
 0x124   :  { %1032 = vmatpush3.bf16.msra.mxu0 %v1175_v50 }
 0x125   :  { %1033 = vmatprep.subr.bf16.mxu0 %v1176_v51 }
 0x128   :  { %1034 = vmatpush3.bf16.msra.mxu0 %v1177_v52 }
 0x129   :  { %1035 = vmatprep.subr.bf16.mxu0 %v1178_v53 }
 0x12c   :  { %1036 = vmatpush3.bf16.msra.mxu0 %v1179_v54 }
 0x12d   :  { %1037 = vmatprep.subr.bf16.mxu0 %v1180_v55 }
 0x130   :  { %1038 = vmatpush3.bf16.msra.mxu0 %v1181_v56 }
 0x1d3   :  { %v687_v58 = vpop.f32.mrf.mxu0 }
 0x1d4   :  { %v688_v0 = vadd.f32 %v687_v58, %v326_v60 }
 0x1d5   :  { %v689_v59 = vpop.f32.mrf.mxu0 }
 0x1d6   :  { %v690_v2 = vadd.f32 %v689_v59, %v330_v62 }
 0x1d7   :  { %v691_v61 = vpop.f32.mrf.mxu0 }
 0x1d9   :  { %v692_v63 = vpop.f32.mrf.mxu0 }
 0x1db   :  { %v728_v1 = vpop.f32.mrf.mxu1 }
 0x1dc   :  { %v729_v3 = vadd.f32 %v728_v1, %v688_v0 }
 0x1dd   :  { %v730_v4 = vpop.f32.mrf.mxu1 }
 0x1de   :  { %v731_v5 = vadd.f32 %v730_v4, %v690_v2  ;;  %v735_v6 = vmax.f32 %v729_v3, 0.0 }
 0x1df   :  { %v732_v7 = vpop.f32.mrf.mxu1 }
 0x1e0   :  { %v736_v8 = vmax.f32 %v731_v5, 0.0  ;;  %v737_v11 = vpack.c.bf16 %v735_v6, %v735_v6 }
 0x1e1   :  { %v733_v9 = vpop.f32.mrf.mxu1 }
 0x1e2   :  { %v738_v10 = vpack.c.bf16 %v736_v8, %v736_v8 }
 0x1e4   :  { %906 = vmatprep.mubr.bf16.mxu0 %v738_v10 }
 0x1e5   :  { %907 = vmatmul.mubr.bf16.vlgmr.msra.gmra.mxu0 %v737_v11 }
 0x2a5   :  { %v1039_v13 = vpop.f32.mrf.mxu0 }
 0x2a7   :  { %v1040_v14 = vpop.f32.mrf.mxu0 }
 0x2a8   :  { %v1041_v15 = vadd.f32 %v1040_v14, %v1039_v13 }
 0x2a9   :  { %v1042_v16 = vpop.f32.mrf.mxu0 }
 0x2aa   :  { %v909_v17 = vadd.f32 %v1041_v15, %v1006_v12 }
 0x2ab   :  { %v1043_v18 = vpop.f32.mrf.mxu0 }
 0x2ac   :  { %914 = vst [vmem:[#allocation11] sm:$0xff] %v909_v17 }
 0x2ad   :  { %1293 = shalt.err (!%p1290_p1)
}
 0x2ae   :  { %924 = dma.vmem_to_hbm [thread:$0]  %s922_s8, 128, %s1410_s7, [#allocation4]  }
 0x2af   :  { %1308 = dma.done.wait [#allocation4], 128  }
 0x2b0   :  { %1309 = vsyncadd [#allocation4], 4294967168 }
 0x2b1   :  { %928 = vsyncpa [#allocation3], 1 }
 0x2b2   :  { %929 = vsyncpa [#allocation6], 1 }
 0x2b3   :  { %930 = vsyncpa [#allocation9], 1 }
 0x2b4   :  { %931 = vsyncpa [#allocation4], 1 }

</bundles_post_ra>
